<compile_context>
chip_gen: v5e
topology: v5e:2x2
jax: 0.10.0
libtpu: 0.0.40
codegen_flags: <defaults>
</compile_context>

<pallas_src>
import functools

import jax
import jax.numpy as jnp
import numpy as np
from jax.experimental import pallas as pl
from jax.experimental.pallas import tpu as pltpu

RADIUS = 1.0
EPS = 1e-7
LANE = 128
TARGET_BLOCK_BYTES = 2 * 1024 * 1024   # ~2 MiB per input block per grid step
MAX_TILE_E = 65536                     # lane cap per grid step


def _round_up(x, m):
    return ((x + m - 1) // m) * m


def invdist_kernel(zs_ref, zd_ref, inv_ref, max_ref, *, radius):
    """Per-tile inverse hyperboloid distance + per-tile partial max."""
    zs = zs_ref[...].astype(jnp.float32)                   # (D, TILE_E)
    zd = zd_ref[...].astype(jnp.float32)                   # (D, TILE_E)

    prod = zs * zd                                         # VPU
    # Minkowski dot: -x0*y0 + sum_{d>0} xd*yd == sum_d(prod) - 2*prod[0]
    mink = jnp.sum(prod, axis=0, keepdims=True) - 2.0 * prod[0:1, :]   # (1, TILE_E)

    theta = jnp.maximum(-mink * (1.0 / (radius * radius)), 1.0 + EPS)
    # arccosh(theta), cancellation-free form:  u = theta - 1
    #   arccosh(theta) = log1p(u + sqrt(u*(u+2)))
    u = theta - 1.0
    w = u + jnp.sqrt(u * (u + 2.0))
    dist = radius * jnp.log1p(w)
    # Exact divide on purpose (see revision notes): HBM-bound, and the
    # approx-vrcp error would be amplified by the downstream exp().
    inv_dist = 1.0 / dist                                  # (1, TILE_E)

    inv_ref[...] = inv_dist                                # unmasked, lane-dense
    # Per-tile partial max -> this tile's own (1,128) block.  No cross-step
    # accumulator, so the grid axis is safely "parallel" (megacore on v7x).
    tile_max = jnp.max(inv_dist, axis=1, keepdims=True)    # (1, 1)
    max_ref[...] = jnp.broadcast_to(tile_max, (1, LANE))


def softmax_decoder_forward(z, edge_index, p, radius=RADIUS, tile_e=None):
    """z: (N, D) hyperboloid embeddings, edge_index: (2, E) int.  Returns (E,)."""
    del p  # sigmoid(p) cancels exactly in scores / max(scores) (forward-only).

    N, D = z.shape
    src = edge_index[0].astype(jnp.int32)
    dst = edge_index[1].astype(jnp.int32)
    E = int(src.shape[0])
    itemsize = jnp.dtype(z.dtype).itemsize

    if tile_e is None:
        tile_e = min(MAX_TILE_E, max(LANE, TARGET_BLOCK_BYTES // (D * itemsize)))
    tile_e = max(LANE, _round_up(min(tile_e, _round_up(E, LANE)), LANE))
    e_pad = _round_up(E, tile_e)
    n_tiles = e_pad // tile_e

    if e_pad != E:
        # Replicate the last real edge into padded lanes: their inv_dist equals
        # a real edge's value, so no in-kernel masking is needed and they can
        # never win the global max.  The wrapper slices [:E] anyway.
        src = jnp.pad(src, (0, e_pad - E), mode="edge")
        dst = jnp.pad(dst, (0, e_pad - E), mode="edge")

    # Lane-dense gather glue: emit (D, E_pad) directly -- no standalone
    # (E, D) -> (D, E) transpose pass.  z stays in its native dtype.
    zt = z.T                                    # (D, N), tiny
    zs_t = jnp.take(zt, src, axis=1)            # (D, e_pad)
    zd_t = jnp.take(zt, dst, axis=1)            # (D, e_pad)

    in_block_bytes = D * tile_e * itemsize
    vmem_limit = int(min(64 << 20, max(32 << 20, 8 * in_block_bytes)))

    inv_dist, part_max = pl.pallas_call(
        functools.partial(invdist_kernel, radius=float(radius)),
        out_shape=(jax.ShapeDtypeStruct((1, e_pad), jnp.float32),
                   jax.ShapeDtypeStruct((1, n_tiles * LANE), jnp.float32)),
        grid=(n_tiles,),
        in_specs=[pl.BlockSpec((D, tile_e), lambda i: (0, i)),
                  pl.BlockSpec((D, tile_e), lambda i: (0, i))],
        out_specs=(pl.BlockSpec((1, tile_e), lambda i: (0, i)),
                   pl.BlockSpec((1, LANE), lambda i: (0, i))),
        compiler_params=pltpu.CompilerParams(
            dimension_semantics=("parallel",),
            vmem_limit_bytes=vmem_limit),
    )(zs_t, zd_t)

    run_max = jnp.max(part_max)                 # tiny reduction over partials
    # probs = scores / max(scores) == exp(inv_dist - max(inv_dist)).
    # Plain-JAX epilogue: XLA fuses slice + sub + exp (no tiny Pallas tiles).
    return jnp.exp(inv_dist[0, :E] - run_max)


def reference_forward(z, edge_index, p, radius=RADIUS):
    """Unsimplified pure-JAX reference mirroring the PyTorch module."""
    zs = z[edge_index[0]].astype(jnp.float32)
    zd = z[edge_index[1]].astype(jnp.float32)
    prod = zs * zd
    mink = jnp.sum(prod, axis=1) - 2.0 * prod[:, 0]
    theta = jnp.maximum(-mink / (radius * radius), 1.0 + EPS)
    dist = radius * jnp.arccosh(theta)
    inv_dist = 1.0 / dist
    sm = jax.nn.softmax(inv_dist)
    scores = jax.nn.sigmoid(jnp.float32(p)) * sm
    return scores / jnp.max(scores)


if __name__ == "__main__":
    key = jax.random.PRNGKey(0)

    N, D, E = 32, 8, 200                         # small synthetic sizes
    k_sp, k_src, k_dst = jax.random.split(key, 3)

    # Points on the hyperboloid: -x0^2 + ||x_spatial||^2 = -radius^2
    x_spatial = jax.random.normal(k_sp, (N, D - 1), dtype=jnp.float32)
    x0 = jnp.sqrt(RADIUS * RADIUS +
                  jnp.sum(x_spatial * x_spatial, axis=1, keepdims=True))
    z = jnp.concatenate([x0, x_spatial], axis=1)  # (N, D)

    # Random edges with distinct endpoints (distances strictly > 0).
    src = jax.random.randint(k_src, (E,), 0, N, dtype=jnp.int32)
    dst_raw = jax.random.randint(k_dst, (E,), 0, N - 1, dtype=jnp.int32)
    dst = dst_raw + (dst_raw >= src).astype(jnp.int32)
    edge_index = jnp.stack([src, dst], axis=0)    # (2, E)

    p_param = 0.5                                 # nn.Parameter init (fwd no-op)

    ref = reference_forward(z, edge_index, p_param)

    # tile_e=128 -> 2 grid tiles: exercises per-tile partial maxima, the
    # wrapper-side max reduction, and the edge-replication padding.
    probs = softmax_decoder_forward(z, edge_index, p_param, tile_e=128)
    probs = jax.block_until_ready(probs)
    np.testing.assert_allclose(np.asarray(probs), np.asarray(ref),
                               rtol=2e-4, atol=1e-6)
    assert probs.shape == (E,)

    # Default (auto) tile: single-tile path.
    probs2 = softmax_decoder_forward(z, edge_index, p_param)
    probs2 = jax.block_until_ready(probs2)
    np.testing.assert_allclose(np.asarray(probs2), np.asarray(ref),
                               rtol=2e-4, atol=1e-6)

    print("KERNEL_OK")
</pallas_src>

<mosaic_0001>
module attributes {stable_mosaic.version = 11 : i64} {
  func.func @invdist_kernel(%arg0: i32, %arg1: memref<8x128xf32, #tpu.memory_space<vmem>>, %arg2: memref<8x128xf32, #tpu.memory_space<vmem>>, %arg3: memref<1x128xf32, #tpu.memory_space<vmem>>, %arg4: memref<1x128xf32, #tpu.memory_space<vmem>>) attributes {dimension_semantics = [#tpu.dimension_semantics<parallel>], iteration_bounds = array<i64: 2>, scalar_prefetch = 0 : i64, scratch_operands = 0 : i64, tpu.core_type = #tpu.core_type<tc>, window_params = [{transform_indices = @transform_0, window_bounds = array<i64: 8, 128>}, {transform_indices = @transform_1, window_bounds = array<i64: 8, 128>}, {transform_indices = @transform_2, window_bounds = array<i64: 1, 128>}, {transform_indices = @transform_3, window_bounds = array<i64: 1, 128>}]} {
    %c0 = arith.constant 0 : index
    %c0_0 = arith.constant 0 : index
    %0 = vector.load %arg1[%c0, %c0_0] : memref<8x128xf32, #tpu.memory_space<vmem>>, vector<8x128xf32>
    %c0_1 = arith.constant 0 : index
    %c0_2 = arith.constant 0 : index
    %1 = vector.load %arg2[%c0_1, %c0_2] : memref<8x128xf32, #tpu.memory_space<vmem>>, vector<8x128xf32>
    %2 = arith.mulf %0, %1 : vector<8x128xf32>
    %cst = arith.constant dense<0.000000e+00> : vector<128xf32>
    %3 = vector.multi_reduction <add>, %2, %cst [0] : vector<8x128xf32> to vector<128xf32>
    %4 = vector.shape_cast %3 : vector<128xf32> to vector<1x128xf32>
    %5 = vector.extract_strided_slice %2 {offsets = [0, 0], sizes = [1, 128], strides = [1, 1]} : vector<8x128xf32> to vector<1x128xf32>
    %cst_3 = arith.constant 2.000000e+00 : f32
    %6 = vector.broadcast %cst_3 : f32 to vector<1x128xf32>
    %7 = arith.mulf %6, %5 : vector<1x128xf32>
    %8 = arith.subf %4, %7 : vector<1x128xf32>
    %cst_4 = arith.constant 0.000000e+00 : f32
    %9 = vector.broadcast %cst_4 : f32 to vector<1x128xf32>
    %10 = arith.subf %9, %8 : vector<1x128xf32>
    %cst_5 = arith.constant 1.000000e+00 : f32
    %11 = vector.broadcast %cst_5 : f32 to vector<1x128xf32>
    %12 = arith.mulf %10, %11 : vector<1x128xf32>
    %cst_6 = arith.constant 1.00000012 : f32
    %13 = vector.broadcast %cst_6 : f32 to vector<1x128xf32>
    %14 = arith.maximumf %12, %13 : vector<1x128xf32>
    %cst_7 = arith.constant 1.000000e+00 : f32
    %15 = vector.broadcast %cst_7 : f32 to vector<1x128xf32>
    %16 = arith.subf %14, %15 : vector<1x128xf32>
    %cst_8 = arith.constant 2.000000e+00 : f32
    %17 = vector.broadcast %cst_8 : f32 to vector<1x128xf32>
    %18 = arith.addf %16, %17 : vector<1x128xf32>
    %19 = arith.mulf %16, %18 : vector<1x128xf32>
    %20 = math.sqrt %19 : vector<1x128xf32>
    %21 = arith.addf %16, %20 : vector<1x128xf32>
    %22 = math.log1p %21 : vector<1x128xf32>
    %cst_9 = arith.constant 1.000000e+00 : f32
    %23 = vector.broadcast %cst_9 : f32 to vector<1x128xf32>
    %24 = arith.mulf %23, %22 : vector<1x128xf32>
    %cst_10 = arith.constant 1.000000e+00 : f32
    %25 = vector.broadcast %cst_10 : f32 to vector<1x128xf32>
    %26 = arith.divf %25, %24 : vector<1x128xf32>
    %c0_11 = arith.constant 0 : index
    %c0_12 = arith.constant 0 : index
    %27 = vector.load %arg3[%c0_11, %c0_12] : memref<1x128xf32, #tpu.memory_space<vmem>>, vector<1x128xf32>
    tpu.vector_store %arg3[%c0_11, %c0_12], %26 {strides = array<i32>} : memref<1x128xf32, #tpu.memory_space<vmem>>, vector<1x128xf32>,
    %cst_13 = arith.constant dense<0xFF800000> : vector<1xf32>
    %28 = vector.multi_reduction <maximumf>, %26, %cst_13 [1] : vector<1x128xf32> to vector<1xf32>
    %29 = vector.shape_cast %28 : vector<1xf32> to vector<1x1xf32>
    %30 = vector.shape_cast %29 : vector<1x1xf32> to vector<1x1xf32>
    %31 = vector.broadcast %30 : vector<1x1xf32> to vector<1x128xf32>
    %c0_14 = arith.constant 0 : index
    %c0_15 = arith.constant 0 : index
    %32 = vector.load %arg4[%c0_14, %c0_15] : memref<1x128xf32, #tpu.memory_space<vmem>>, vector<1x128xf32>
    tpu.vector_store %arg4[%c0_14, %c0_15], %31 {strides = array<i32>} : memref<1x128xf32, #tpu.memory_space<vmem>>, vector<1x128xf32>,
    return
  }
  func.func @transform_0(%arg0: i32) -> (i32, i32) {
    %c0_i32 = arith.constant 0 : i32
    %c0_i32_0 = arith.constant 0 : i32
    return %c0_i32, %arg0 : i32, i32
  }
  func.func @transform_1(%arg0: i32) -> (i32, i32) {
    %c0_i32 = arith.constant 0 : i32
    %c0_i32_0 = arith.constant 0 : i32
    return %c0_i32, %arg0 : i32, i32
  }
  func.func @transform_2(%arg0: i32) -> (i32, i32) {
    %c0_i32 = arith.constant 0 : i32
    %c0_i32_0 = arith.constant 0 : i32
    return %c0_i32, %arg0 : i32, i32
  }
  func.func @transform_3(%arg0: i32) -> (i32, i32) {
    %c0_i32 = arith.constant 0 : i32
    %c0_i32_0 = arith.constant 0 : i32
    return %c0_i32, %arg0 : i32, i32
  }
}

</mosaic_0001>

<bundles_post_ra>
// kernel: tpu_custom_call.1
= control target key start
LH: loop header
LB: loop body
LE: loop exit
PB: predicated region body
PF: predicated region fallthrough
CT: control target
= control target key end

     0   :  { %9 = vsyncpa [#allocation3], 0  ;;  %s878_s0 = inlined_call_operand.hbm [shape: f32[8,256], index: 0, kind: input, shape index: {}]   ;;  %s879_s1 = inlined_call_operand.hbm [shape: f32[8,256], index: 1, kind: input, shape index: {}]   ;;  %s880_s2 = inlined_call_operand.hbm [shape: f32[1,256], index: 2, kind: output, shape index: {0}]   ;;  %s881_s3 = inlined_call_operand.hbm [shape: f32[1,256], index: 3, kind: output, shape index: {1}]  }
   0x1   :  { %11 = vsyncpa [#allocation3 + $0x1], 0 }
   0x2   :  { %12 = vsyncpa [#allocation6], 0 }
   0x3   :  { %14 = vsyncpa [#allocation6 + $0x1], 0 }
   0x4   :  { %15 = vsyncpa [#allocation4], 0 }
   0x5   :  { %17 = vsyncpa [#allocation4 + $0x1], 0 }
   0x6   :  { %18 = vsyncpa [#allocation9], 0 }
   0x7   :  { %20 = vsyncpa [#allocation9 + $0x1], 0  ;;  %s701_s12 = smov 0   ;;  %s703_s13 = smov 0  }
   0x8   :  { %s705_s14 = smov 0   ;;  %s707_s15 = smov 0  }
   0x9 LB: > { %s722_s16 = sadd.s32 4294967295, %s679_s15   ;;  %s442_s17 = sadd.s32 4294967294, %s679_s15   ;;  %s679_s15 = sphi %s707_s15, %s892_s15   ;;  %s675_s14 = sphi %s705_s14, %s891_s14   ;;  %s671_s13 = sphi %s703_s13, %s890_s13   ;;  %s667_s12 = sphi %s701_s12, %s889_s12  }
   0xa   : > { %s726_s18 = sadd.s32 1, %s679_s15   ;;  %s33_s19 = sadd.s32 1, %s675_s14 }
   0xb   : > { %s30_s20 = ssub.s32 %s679_s15, %s726_s18  ;;  %p40_p0 = scmp.ne.s32.totalorder %s675_s14, %s671_s13 }
   0xc   : > { %p31_p1 = scmp.eq.s32.totalorder %s30_s20, 0  ;;  %p41_p2 = scmp.eq.s32.totalorder %s679_s15, 0 }
   0xd   : > { %p46_p3 = scmp.ne.s32.totalorder %s671_s13, %s667_s12  ;;  %p47_p4 = scmp.eq.s32.totalorder %s722_s16, 0 }
   0xe   : > { %s738_s21 = scalar_select %p31_p1, %s675_s14, %s33_s19  }
   0xf   : > { %p740_p5 = por %p41_p2, %p40_p0  ;;  %p744_p6 = por %p47_p4, %p46_p3 }
  0x10   : > { %p96_p7 = scmp.eq.s32.totalorder %s722_s16, 1  ;;  %p102_p8 = scmp.eq.s32.totalorder %s442_s17, 1 }
  0x11   : > { %p477_p10 = scmp.lt.s32.totalorder %s679_s15, 2  ;;  %s760_s26 = sand.u32 1, %s675_s14  }
  0x12   : > { %p751_p11 = por %p96_p7, %p40_p0  ;;  %p755_p12 = por %p102_p8, %p46_p3 }
  0x13   : > { %s446_s27 = sshll.u32 %s679_s15, 3  ;;  %s445_s28 = sshll.u32 %s760_s26, 3 }
  0x14   : > { %s156_s4 = scalar_lea.hbm %s878_s0, %s446_s27  ;;  %s152_s6 = scalar_lea.vmem [#allocation2], %s445_s28 }
  0x15   : > { %s158_s5 = sshll.u32 %s156_s4, 4  ;;  %s160_s7 = sshll.u32 %s152_s6, 4  ;;  %s159_s5 = int_to_ptr.hbm [resolvable:$true] %s158_s5  ;;  %s161_s7 = int_to_ptr.vmem [resolvable:$true] %s160_s7 }
  0x16   : > { %p769_p13 = pnand %p477_p10, %p740_p5  ;;  %p449_p0 = scmp.ge.s32.totalorder %s679_s15, 1 }
  0x17   : > { %p184_p1 = scmp.lt.s32.totalorder %s679_s15, 3  ;;  %s149_s9 = scalar_lea.sflag [#allocation3], %s760_s26 }
  0x18   : > { %s517_s10 = sshra.s32 %s159_s5, 4  ;;  %p521_p3 = pneg %p769_p13  ;;  %s518_s10 = int_to_ptr.hbm [resolvable:$true] %s517_s10 }
  0x19   : > { %s519_s11 = scalar_lea.hbm %s518_s10, 8  ;;  %s524_s20 = scalar_lea.hbm %s878_s0, 16 }
  0x1a   : > { %p520_p2 = scmp.ne.s32.totalorder %s518_s10, %s519_s11  ;;  %p525_p5 = scmp.lt.s32.totalorder %s518_s10, %s878_s0 }
  0x1b   : > { %p526_p8 = scmp.lt.s32.totalorder %s524_s20, %s519_s11 }
  0x1c   : > { %p522_p4 = pnand %p521_p3, %p520_p2 }
  0x1d   : > { %p527_p10 = por %p526_p8, %p525_p5 }
  0x1e   : > { %p523_p7 = pneg %p522_p4 }
  0x20   : > { %p528_p9 = pnand %p527_p10, %p523_p7 }
  0x22   : > { %531 = shalt.err (!%p528_p9)
}
  0x23   : > { %466 = dma.hbm_to_vmem [thread:$0]  (!%p769_p13), %s159_s5, 128, %s161_s7, %s149_s9  }
  0x24   : > { %p793_p2 = pnand %p449_p0, %p184_p1  ;;  %s175_s10 = scalar_lea.hbm %s879_s1, %s446_s27 }
  0x25   : > { %s177_s11 = sshll.u32 %s175_s10, 4  ;;  %s171_s17 = scalar_lea.vmem [#allocation5], %s445_s28  ;;  %s178_s11 = int_to_ptr.hbm [resolvable:$true] %s177_s11 }
  0x26   : > { %s179_s19 = sshll.u32 %s171_s17, 4  ;;  %s168_s20 = scalar_lea.sflag [#allocation6], %s760_s26  ;;  %s180_s19 = int_to_ptr.vmem [resolvable:$true] %s179_s19 }
  0x27   : > { %s547_s22 = sshra.s32 %s178_s11, 4  ;;  %s554_s9 = scalar_lea.hbm %s879_s1, 16  ;;  %s548_s22 = int_to_ptr.hbm [resolvable:$true] %s547_s22 }
  0x28   : > { %s549_s29 = scalar_lea.hbm %s548_s22, 8  ;;  %p555_p4 = scmp.lt.s32.totalorder %s548_s22, %s879_s1 }
  0x29   : > { %p550_p9 = scmp.ne.s32.totalorder %s548_s22, %s549_s29  ;;  %p556_p7 = scmp.lt.s32.totalorder %s554_s9, %s549_s29 }
  0x2b   : > { %p552_p0 = pnand %p550_p9, %p521_p3  ;;  %p557_p5 = por %p556_p7, %p555_p4 }
  0x2d   : > { %p553_p1 = pneg %p552_p0 }
  0x2f   : > { %p558_p8 = pnand %p557_p5, %p553_p1 }
  0x31   : > { %561 = shalt.err (!%p558_p8)
}
  0x32   : > { %469 = dma.hbm_to_vmem [thread:$0]  (!%p769_p13), %s178_s11, 128, %s180_s19, %s168_s20  }
  0x33   : > { %188 = sbr.rel (%p793_p2) target bundleno = 258 (0x102), region = 28  ;;  %s815_s26 = sand.u32 (!%p793_p2), 1, %s671_s13  }
  0x34   : > { %s450_s28 = sshll.u32 (!%p793_p2), %s815_s26, 3  ;;  %s191_s6 = scalar_lea.sflag (!%p793_p2), [#allocation3], %s815_s26 }
  0x35   : > { %s194_s10 = scalar_lea.vmem (!%p793_p2), [#allocation2], %s450_s28 }
  0x38   : > { %650 = dma.done.wait (%p744_p6), %s191_s6, 128  }
  0x39   : > { %652 = vsyncadd (%p744_p6), %s191_s6, 4294967168  ;;  %s201_s8 = scalar_lea.sflag [#allocation6], %s815_s26  ;;  %s204_s11 = scalar_lea.vmem [#allocation5], %s450_s28 }
  0x3a   : > { %654 = dma.done.wait (%p744_p6), %s201_s8, 128  }
  0x3b   : > { %656 = vsyncadd (%p744_p6), %s201_s8, 4294967168  ;;  %v236_v0 = vld [vmem:[%s194_s10] sm:$0xff]  ;;  %v237_v1 = vld [vmem:[%s204_s11] sm:$0xff]  ;;  %s308_s17 = scalar_lea.hbm %s880_s2, %s722_s16  ;;  %s229_s19 = scalar_lea.vmem [#allocation7], %s815_s26  ;;  %vm290_vm7 = vcmask 1040384  }
  0x3c   : > { %v238_v2 = vmul.f32 %v237_v1, %v236_v0  ;;  %s310_s20 = sshll.u32 %s229_s19, 4  ;;  %s312_s22 = sshll.u32 %s308_s17, 4  ;;  %s311_s20 = int_to_ptr.vmem [resolvable:$true] %s310_s20  ;;  %s313_s22 = int_to_ptr.hbm [resolvable:$true] %s312_s22 }
  0x3d   : > { %s296_s29 = scalar_lea.sflag [#allocation4], %s815_s26  ;;  %s591_s5 = sshra.s32 %s313_s22, 4  ;;  %s592_s5 = int_to_ptr.hbm [resolvable:$true] %s591_s5 }
  0x3e   : > { %v239_v3 = vrot.slane %v238_v2, 4  ;;  %v245_v8 = vmul.f32 2.0, %v238_v2  ;;  %s593_s7 = scalar_lea.hbm %s592_s5, 1  ;;  %s597_s27 = scalar_lea.hbm %s880_s2, 2 }
  0x3f   : > { %p594_p6 = scmp.ne.s32.totalorder %s592_s5, %s593_s7  ;;  %p598_p10 = scmp.lt.s32.totalorder %s592_s5, %s880_s2 }
  0x40   : > { %v240_v4 = vadd.f32 %v239_v3, %v238_v2  ;;  %p599_p2 = scmp.lt.s32.totalorder %s597_s27, %s593_s7 }
  0x41   : > { %p595_p13 = pnand %p594_p6, %p751_p11 }
  0x42   : > { %v241_v5 = vrot.slane %v240_v4, 2  ;;  %p600_p9 = por %p599_p2, %p598_p10 }
  0x43   : > { %p596_p3 = pneg %p595_p13 }
  0x44   : > { %v242_v6 = vadd.f32 %v241_v5, %v240_v4 }
  0x45   : > { %p601_p0 = pnand %p600_p9, %p596_p3 }
  0x46   : > { %v243_v7 = vrot.slane %v242_v6, 1 }
  0x48   : > { %v244_v9 = vadd.f32 %v243_v7, %v242_v6 }
  0x4a   : > { %v246_v10 = vsub.f32 %v244_v9, %v245_v8 }
  0x4c   : > { %v247_v11 = vsub.f32 0.0, %v246_v10 }
  0x4e   : > { %v248_v12 = vmax.f32 %v247_v11, 1.0000001 }
  0x50   : > { %v452_v13 = vadd.f32 -1.0, %v248_v12 }
  0x52   : > { %v250_v14 = vadd.f32 2.0, %v452_v13 }
  0x54   : > { %v251_v15 = vmul.f32 %v452_v13, %v250_v14 }
  0x56   : > { %511 = vrsqrt.f32 %v251_v15  ;;  %vm259_vm0 = vcmp.eq.f32.partialorder %v251_v15, inf  ;;  %v262_v22 = vand.u32 2147483648, %v251_v15  ;;  %vm261_vm1 = vcmp.eq.f32.partialorder %v251_v15, 0.0 }
  0x5c   : > { %v512_v16 = vpop.eup %511 }
  0x5d   : > { %v253_v17 = vmul.f32 %v512_v16, %v251_v15 }
  0x5f   : > { %v254_v18 = vmul.f32 %v512_v16, %v253_v17 }
  0x61   : > { %v255_v19 = vmul.f32 0.5, %v254_v18 }
  0x63   : > { %v256_v20 = vsub.f32 1.5, %v255_v19 }
  0x65   : > { %v257_v21 = vmul.f32 %v512_v16, %v256_v20 }
  0x67   : > { %v258_v23 = vmul.f32 %v257_v21, %v251_v15 }
  0x69   : > { %v260_v24 = vsel %vm259_vm0, %v251_v15, %v258_v23 }
  0x6a   : > { %v263_v25 = vsel %vm261_vm1, %v262_v22, %v260_v24 }
  0x6b   : > { %v264_v26 = vadd.f32 %v452_v13, %v263_v25 }
  0x6d   : > { %v265_v27 = vadd.f32 1.0, %v264_v26  ;;  %v268_v28 = vmul.f32 -0.5, %v264_v26  ;;  %v271_v30 = vand.u32 2147483647, %v264_v26 }
  0x6f   : > { %513 = vlog2.f32 %v265_v27  ;;  %v269_v29 = vadd.f32 1.0, %v268_v28  ;;  %vm272_vm2 = vcmp.lt.f32.partialorder %v271_v30, 0.0004427343 }
  0x71   : > { %v270_v31 = vmul.f32 %v269_v29, %v264_v26 }
  0x75   : > { %v514_v32 = vpop.eup %513 }
  0x76   : > { %v267_v33 = vmul.f32 0.6931472, %v514_v32 }
  0x78   : > { %v273_v34 = vsel %vm272_vm2, %v270_v31, %v267_v33 }
  0x79   : > { %515 = vrcp.f32 %v273_v34  ;;  %v285_v37 = vand.u32 2147483648, %v273_v34  ;;  %vm279_vm3 = vweird.f32 %v273_v34  ;;  %v283_v39 = vand.u32 2147483647, %v273_v34 }
  0x7b   : > { %v286_v41 = vor.u32 1.1754944e-38, %v285_v37  ;;  %vm284_vm6 = vcmp.eq.f32.partialorder %v283_v39, 8.507059e+37 }
  0x7f   : > { %v516_v35 = vpop.eup %515 }
  0x80   : > { %v275_v36 = vmul.f32 %v516_v35, %v273_v34  ;;  %vm280_vm4 = vweird.f32 %v516_v35 }
  0x81   : > { %vm281_vm5 = vmor %vm279_vm3, %vm280_vm4 }
  0x82   : > { %v276_v38 = vsub.f32 1.0, %v275_v36 }
  0x84   : > { %v277_v40 = vmul.f32 %v516_v35, %v276_v38 }
  0x86   : > { %v278_v42 = vadd.f32 %v516_v35, %v277_v40 }
  0x88   : > { %v282_v43 = vsel %vm281_vm5, %v516_v35, %v278_v42 }
  0x89   : > { %v287_v44 = vsel %vm284_vm6, %v286_v41, %v282_v43 }
  0x8a   : > { %289 = vst [vmem:[%s229_s19] sm:$0x1] %v287_v44  ;;  %v291_v45 = vsel %vm290_vm7, %v287_v44, -inf }
  0x8b   : > { %292 = vmax.xlane.f32.xlu0 %v291_v45 }
  0x8c   : > { %604 = shalt.err (!%p601_p0)
}
  0x8d   : > { %459 = dma.vmem_to_hbm [thread:$0]  (%p751_p11), %s311_s20, 16, %s313_s22, %s296_s29  }
  0x8e   : > { %s321_s11 = scalar_lea.hbm %s881_s3, %s722_s16  ;;  %s235_s23 = scalar_lea.vmem [#allocation8], %s815_s26 }
  0x8f   : > { %s323_s30 = sshll.u32 %s235_s23, 4  ;;  %s325_s17 = sshll.u32 %s321_s11, 4  ;;  %s324_s30 = int_to_ptr.vmem [resolvable:$true] %s323_s30  ;;  %s326_s17 = int_to_ptr.hbm [resolvable:$true] %s325_s17 }
  0x90   : > { %s300_s19 = scalar_lea.sflag [#allocation9], %s815_s26  ;;  %s619_s5 = sshra.s32 %s326_s17, 4  ;;  %s620_s5 = int_to_ptr.hbm [resolvable:$true] %s619_s5 }
  0x91   : > { %s621_s7 = scalar_lea.hbm %s620_s5, 1  ;;  %s625_s29 = scalar_lea.hbm %s881_s3, 2 }
  0x92   : > { %p622_p1 = scmp.ne.s32.totalorder %s620_s5, %s621_s7  ;;  %p626_p5 = scmp.lt.s32.totalorder %s620_s5, %s881_s3 }
  0x93   : > { %p627_p8 = scmp.lt.s32.totalorder %s625_s29, %s621_s7 }
  0x94   : > { %p623_p4 = pnand %p622_p1, %p751_p11 }
  0x95   : > { %p628_p6 = por %p627_p8, %p626_p5 }
  0x96   : > { %p624_p7 = pneg %p623_p4 }
  0x98   : > { %p629_p13 = pnand %p628_p6, %p624_p7 }
  0xfe   : > { %v293_v46 = vpop.xlane.xlu0 %292 }
  0xff   : > { %294 = vst [vmem:[%s235_s23] sm:$0x1] %v293_v46 }
 0x100   : > { %632 = shalt.err (!%p629_p13)
}
 0x101   : > { %460 = dma.vmem_to_hbm [thread:$0]  (%p751_p11), %s324_s30, 16, %s326_s17, %s300_s19  }
 0x102 PF: > { %s337_s26 = sand.u32 1, %s667_s12   ;;  %p888_p3 = scmp.ge.s32.totalorder %s679_s15, 2 }
 0x103   : > { %s338_s4 = scalar_lea.sflag [#allocation4], %s337_s26 }
 0x104   : > { %p471_p10 = pnand %p888_p3, %p755_p12 }
 0x106   : > { %p472_p2 = pneg %p471_p10 }
 0x108   : > { %658 = dma.done.wait (%p472_p2), %s338_s4, 16  }
 0x109   : > { %660 = vsyncadd (%p472_p2), %s338_s4, 4294967280  ;;  %s347_s27 = scalar_lea.sflag [#allocation9], %s337_s26 }
 0x10a   : > { %662 = dma.done.wait (%p472_p2), %s347_s27, 16  }
 0x10b   : > { %664 = vsyncadd (%p472_p2), %s347_s27, 4294967280  ;;  %p23_p11 = scmp.ge.s32.totalorder %s726_s18, 4   ;;  %s889_s12 = smov %s671_s13 }
 0x10c   : > { %s890_s13 = smov %s675_s14  ;;  %s891_s14 = smov %s738_s21 }
 0x10d   : > { %s892_s15 = smov %s726_s18  ;;  %25 = sbr.rel (!%p23_p11) target bundleno = 9 (0x9), region = 103 }
 0x112   :  { %352 = vsyncpa [#allocation3], 1 }
 0x113   :  { %354 = vsyncpa [#allocation3 + $0x1], 1 }
 0x114   :  { %355 = vsyncpa [#allocation6], 1 }
 0x115   :  { %357 = vsyncpa [#allocation6 + $0x1], 1 }
 0x116   :  { %358 = vsyncpa [#allocation4], 1 }
 0x117   :  { %360 = vsyncpa [#allocation4 + $0x1], 1 }
 0x118   :  { %361 = vsyncpa [#allocation9], 1 }
 0x119   :  { %363 = vsyncpa [#allocation9 + $0x1], 1 }

</bundles_post_ra>
